<compile_context>
chip_gen: v7x
topology: tpu7x:2x2x1
jax: 0.10.0
libtpu: 0.0.40
codegen_flags: <defaults>
</compile_context>

<pallas_src>
import functools

import jax
import jax.numpy as jnp
from jax import lax
from jax.experimental import pallas as pl
from jax.experimental.pallas import tpu as pltpu

_LANE = 128
_SUBLANE = 8


def _round_up(x, m):
    return (x + m - 1) // m * m


# --------------------------------------------------------------------------
# Kernel 1: im2col GEMM (bf16 in, f32 accumulate over K grid axis) with fused
# per-M-tile channel sum / sum-of-squares partials for BatchNorm statistics.
# --------------------------------------------------------------------------
def _conv_gemm_kernel(patch_ref, w_ref, out_ref, psum_ref, psumsq_ref, acc_ref):
    k = pl.program_id(1)
    nk = pl.num_programs(1)

    @pl.when(k == 0)
    def _():
        acc_ref[...] = jnp.zeros_like(acc_ref)

    acc_ref[...] += jnp.dot(patch_ref[...], w_ref[...],
                            preferred_element_type=jnp.float32)

    @pl.when(k == nk - 1)
    def _():
        acc = acc_ref[...]
        out_ref[...] = acc.astype(out_ref.dtype)             # bf16 intermediate
        psum_ref[...] = jnp.sum(acc, axis=0, keepdims=True)
        psumsq_ref[...] = jnp.sum(acc * acc, axis=0, keepdims=True)


# --------------------------------------------------------------------------
# Kernel 2: elementwise y = relu(x * scale + shift)   (per-channel affine)
# --------------------------------------------------------------------------
def _bn_relu_kernel(x_ref, scale_ref, shift_ref, out_ref):
    y = x_ref[...].astype(jnp.float32) * scale_ref[...] + shift_ref[...]
    out_ref[...] = jnp.maximum(y, 0.0)


# --------------------------------------------------------------------------
# Wrapper
# --------------------------------------------------------------------------
@functools.partial(jax.jit, static_argnames=("padding", "eps"))
def conv2d_bn_relu(x, weight, bias, gamma, beta, *, padding=0, eps=1e-5):
    """x: (N, C, H, W); weight: (OutC, C, KH, KW); bias/gamma/beta: (OutC,)."""
    del bias  # per-channel conv bias is exactly cancelled by the BatchNorm
    n, c, h, w = x.shape
    outc, inc, kh, kw = weight.shape
    assert inc == c
    oh = h + 2 * padding - kh + 1
    ow = w + 2 * padding - kw + 1
    m = n * oh * ow
    k_raw = kh * kw * c

    # ---- im2col in NHWC: shifted slices concatenated on the channel axis ----
    x_nhwc = jnp.transpose(x, (0, 2, 3, 1))
    xp = jnp.pad(x_nhwc, ((0, 0), (padding, padding), (padding, padding), (0, 0)))
    cols = [xp[:, i:i + oh, j:j + ow, :] for i in range(kh) for j in range(kw)]
    patches = jnp.concatenate(cols, axis=-1).reshape(m, k_raw)   # (M, KH*KW*C)

    # ---- pad to TPU-friendly, lane-dense shapes ----
    outc_p = _round_up(outc, _LANE)
    if m <= 512:
        tm = _round_up(m, _SUBLANE)
        m_p = tm
    else:
        tm = 512
        m_p = _round_up(m, tm)
    if k_raw <= 512:
        tk = _round_up(k_raw, _LANE)
        k_p = tk
    else:
        tk = 512
        k_p = _round_up(k_raw, tk)
    nm, nk = m_p // tm, k_p // tk

    patches = jnp.pad(patches, ((0, m_p - m), (0, k_p - k_raw))).astype(jnp.bfloat16)
    # weight (OutC, C, KH, KW) -> (KH, KW, C, OutC) -> (K, OutC): matches the
    # patch column ordering (kh, kw, c).
    w2 = weight.transpose(2, 3, 1, 0).reshape(k_raw, outc)
    w2 = jnp.pad(w2, ((0, k_p - k_raw), (0, outc_p - outc))).astype(jnp.bfloat16)

    conv_out, psum, psumsq = pl.pallas_call(
        _conv_gemm_kernel,
        out_shape=(
            jax.ShapeDtypeStruct((m_p, outc_p), jnp.bfloat16),
            jax.ShapeDtypeStruct((nm, outc_p), jnp.float32),
            jax.ShapeDtypeStruct((nm, outc_p), jnp.float32),
        ),
        grid_spec=pltpu.PrefetchScalarGridSpec(
            num_scalar_prefetch=0,
            grid=(nm, nk),                                   # K (reduction) last
            in_specs=[
                pl.BlockSpec((tm, tk), lambda i, k: (i, k)),      # patches tile
                pl.BlockSpec((tk, outc_p), lambda i, k: (k, 0)),  # weight K-tile
            ],
            out_specs=(
                pl.BlockSpec((tm, outc_p), lambda i, k: (i, 0)),  # conv tile
                pl.BlockSpec((1, outc_p), lambda i, k: (i, 0)),   # per-tile sum
                pl.BlockSpec((1, outc_p), lambda i, k: (i, 0)),   # per-tile sumsq
            ),
            scratch_shapes=[pltpu.VMEM((tm, outc_p), jnp.float32)],
        ),
        compiler_params=pltpu.CompilerParams(
            dimension_semantics=("parallel", "arbitrary")),
    )(patches, w2)

    # ---- BatchNorm (training mode) batch statistics per channel ----
    # Zero-padded rows / K-columns contribute exactly 0 (no bias), so the
    # statistics over the true count m are exact.
    count = jnp.float32(m)
    ch_sum = jnp.sum(psum, axis=0)[:outc]
    ch_sumsq = jnp.sum(psumsq, axis=0)[:outc]
    mean = ch_sum / count
    var = jnp.maximum(ch_sumsq / count - mean * mean, 0.0)   # biased variance
    inv_std = lax.rsqrt(var + eps)
    scale = gamma.astype(jnp.float32) * inv_std
    shift = beta.astype(jnp.float32) - mean * scale
    scale_p = jnp.pad(scale, (0, outc_p - outc)).reshape(1, outc_p)
    shift_p = jnp.pad(shift, (0, outc_p - outc)).reshape(1, outc_p)

    y = pl.pallas_call(
        _bn_relu_kernel,
        out_shape=jax.ShapeDtypeStruct((m_p, outc_p), jnp.float32),
        grid_spec=pltpu.PrefetchScalarGridSpec(
            num_scalar_prefetch=0,
            grid=(nm,),
            in_specs=[
                pl.BlockSpec((tm, outc_p), lambda i: (i, 0)),
                pl.BlockSpec((1, outc_p), lambda i: (0, 0)),
                pl.BlockSpec((1, outc_p), lambda i: (0, 0)),
            ],
            out_specs=pl.BlockSpec((tm, outc_p), lambda i: (i, 0)),
        ),
        compiler_params=pltpu.CompilerParams(
            dimension_semantics=("parallel",)),
    )(conv_out, scale_p, shift_p)

    # (M_pad, OutC_pad) -> slice -> (N, OH, OW, OutC) -> NCHW
    y = y[:m, :outc].reshape(n, oh, ow, outc)
    return jnp.transpose(y, (0, 3, 1, 2))


# --------------------------------------------------------------------------
# Pure-JAX f32 reference (includes the conv bias; the kernel drops it because
# BatchNorm cancels it exactly)
# --------------------------------------------------------------------------
def _reference(x, weight, bias, gamma, beta, padding, eps=1e-5):
    conv = lax.conv_general_dilated(
        x, weight, window_strides=(1, 1),
        padding=[(padding, padding), (padding, padding)],
        dimension_numbers=("NCHW", "OIHW", "NCHW"))
    conv = conv + bias.reshape(1, -1, 1, 1)
    mean = jnp.mean(conv, axis=(0, 2, 3), keepdims=True)
    var = jnp.mean((conv - mean) ** 2, axis=(0, 2, 3), keepdims=True)  # biased
    norm = (conv - mean) / jnp.sqrt(var + eps)
    out = norm * gamma.reshape(1, -1, 1, 1) + beta.reshape(1, -1, 1, 1)
    return jnp.maximum(out, 0.0)


if __name__ == "__main__":
    # Module config: Conv2DBatchNormRelu(inc=4, outc=8, k_size=3, padding=1)
    N, INC, OUTC, H, W, K, PAD = 2, 4, 8, 16, 16, 3, 1

    key = jax.random.PRNGKey(0)
    kx, kw_, kb, kg, kbt = jax.random.split(key, 5)

    x = jax.random.normal(kx, (N, INC, H, W), dtype=jnp.float32)
    weight = 0.1 * jax.random.normal(kw_, (OUTC, INC, K, K), dtype=jnp.float32)
    bias = 0.1 * jax.random.normal(kb, (OUTC,), dtype=jnp.float32)
    gamma = 1.0 + 0.1 * jax.random.normal(kg, (OUTC,), dtype=jnp.float32)
    beta = 0.1 * jax.random.normal(kbt, (OUTC,), dtype=jnp.float32)

    out = conv2d_bn_relu(x, weight, bias, gamma, beta, padding=PAD)
    out = jax.block_until_ready(out)

    ref = _reference(x, weight, bias, gamma, beta, PAD)
    assert out.shape == (N, OUTC, H, W)
    # bf16 MXU inputs + bf16 intermediate => relaxed tolerance vs f32 reference
    max_err = float(jnp.max(jnp.abs(out - ref)))
    assert jnp.allclose(out, ref, atol=5e-2, rtol=5e-2), (
        f"mismatch vs reference: max abs err = {max_err}")

    print("KERNEL_OK")
</pallas_src>

<mosaic_0001>
module attributes {stable_mosaic.version = 11 : i64} {
  func.func @_conv_gemm_kernel(%arg0: i32, %arg1: i32, %arg2: memref<512x128xbf16, #tpu.memory_space<vmem>>, %arg3: memref<128x128xbf16, #tpu.memory_space<vmem>>, %arg4: memref<512x128xbf16, #tpu.memory_space<vmem>>, %arg5: memref<1x128xf32, #tpu.memory_space<vmem>>, %arg6: memref<1x128xf32, #tpu.memory_space<vmem>>, %arg7: memref<512x128xf32, #tpu.memory_space<vmem>>) attributes {dimension_semantics = [#tpu.dimension_semantics<parallel>, #tpu.dimension_semantics<arbitrary>], iteration_bounds = array<i64: 1, 1>, scalar_prefetch = 0 : i64, scratch_operands = 1 : i64, tpu.core_type = #tpu.core_type<tc>, window_params = [{transform_indices = @transform_0, window_bounds = array<i64: 512, 128>}, {transform_indices = @transform_1, window_bounds = array<i64: 128, 128>}, {transform_indices = @transform_2, window_bounds = array<i64: 512, 128>}, {transform_indices = @transform_3, window_bounds = array<i64: 1, 128>}, {transform_indices = @transform_4, window_bounds = array<i64: 1, 128>}]} {
    %c0_i32 = arith.constant 0 : i32
    %0 = arith.cmpi eq, %arg1, %c0_i32 : i32
    %1 = arith.extui %0 : i1 to i32
    %c0_i32_0 = arith.constant 0 : i32
    %2 = arith.cmpi ne, %1, %c0_i32_0 : i32
    scf.if %2 {
      %cst_10 = arith.constant 0.000000e+00 : f32
      %12 = vector.broadcast %cst_10 : f32 to vector<512x128xf32>
      %c0_11 = arith.constant 0 : index
      %c0_12 = arith.constant 0 : index
      %13 = vector.load %arg7[%c0_11, %c0_12] : memref<512x128xf32, #tpu.memory_space<vmem>>, vector<512x128xf32>
      tpu.vector_store %arg7[%c0_11, %c0_12], %12 {strides = array<i32>} : memref<512x128xf32, #tpu.memory_space<vmem>>, vector<512x128xf32>,
    } else {
    }
    %c0 = arith.constant 0 : index
    %c0_1 = arith.constant 0 : index
    %3 = vector.load %arg7[%c0, %c0_1] : memref<512x128xf32, #tpu.memory_space<vmem>>, vector<512x128xf32>
    %c0_2 = arith.constant 0 : index
    %c0_3 = arith.constant 0 : index
    %4 = vector.load %arg2[%c0_2, %c0_3] : memref<512x128xbf16, #tpu.memory_space<vmem>>, vector<512x128xbf16>
    %c0_4 = arith.constant 0 : index
    %c0_5 = arith.constant 0 : index
    %5 = vector.load %arg3[%c0_4, %c0_5] : memref<128x128xbf16, #tpu.memory_space<vmem>>, vector<128x128xbf16>
    %cst = arith.constant dense<0.000000e+00> : vector<512x128xf32>
    %6 = tpu.matmul %4, %5, %cst {dimension_numbers = #tpu.dot_dimension_numbers<[1], [0], [0], [1], [0, 0, 1, 1], [], []>} : vector<512x128xbf16>, vector<128x128xbf16>, vector<512x128xf32> -> vector<512x128xf32>
    %7 = arith.addf %3, %6 : vector<512x128xf32>
    %c0_6 = arith.constant 0 : index
    %c0_7 = arith.constant 0 : index
    %8 = vector.load %arg7[%c0_6, %c0_7] : memref<512x128xf32, #tpu.memory_space<vmem>>, vector<512x128xf32>
    tpu.vector_store %arg7[%c0_6, %c0_7], %7 {strides = array<i32>} : memref<512x128xf32, #tpu.memory_space<vmem>>, vector<512x128xf32>,
    %c0_i32_8 = arith.constant 0 : i32
    %9 = arith.cmpi eq, %arg1, %c0_i32_8 : i32
    %10 = arith.extui %9 : i1 to i32
    %c0_i32_9 = arith.constant 0 : i32
    %11 = arith.cmpi ne, %10, %c0_i32_9 : i32
    scf.if %11 {
      %c0_10 = arith.constant 0 : index
      %c0_11 = arith.constant 0 : index
      %12 = vector.load %arg7[%c0_10, %c0_11] : memref<512x128xf32, #tpu.memory_space<vmem>>, vector<512x128xf32>
      %13 = arith.truncf %12 : vector<512x128xf32> to vector<512x128xbf16>
      %c0_12 = arith.constant 0 : index
      %c0_13 = arith.constant 0 : index
      %14 = vector.load %arg4[%c0_12, %c0_13] : memref<512x128xbf16, #tpu.memory_space<vmem>>, vector<512x128xbf16>
      tpu.vector_store %arg4[%c0_12, %c0_13], %13 {strides = array<i32>} : memref<512x128xbf16, #tpu.memory_space<vmem>>, vector<512x128xbf16>,
      %cst_14 = arith.constant dense<0.000000e+00> : vector<128xf32>
      %15 = vector.multi_reduction <add>, %12, %cst_14 [0] : vector<512x128xf32> to vector<128xf32>
      %16 = vector.shape_cast %15 : vector<128xf32> to vector<1x128xf32>
      %c0_15 = arith.constant 0 : index
      %c0_16 = arith.constant 0 : index
      %17 = vector.load %arg5[%c0_15, %c0_16] : memref<1x128xf32, #tpu.memory_space<vmem>>, vector<1x128xf32>
      tpu.vector_store %arg5[%c0_15, %c0_16], %16 {strides = array<i32>} : memref<1x128xf32, #tpu.memory_space<vmem>>, vector<1x128xf32>,
      %18 = arith.mulf %12, %12 : vector<512x128xf32>
      %cst_17 = arith.constant dense<0.000000e+00> : vector<128xf32>
      %19 = vector.multi_reduction <add>, %18, %cst_17 [0] : vector<512x128xf32> to vector<128xf32>
      %20 = vector.shape_cast %19 : vector<128xf32> to vector<1x128xf32>
      %c0_18 = arith.constant 0 : index
      %c0_19 = arith.constant 0 : index
      %21 = vector.load %arg6[%c0_18, %c0_19] : memref<1x128xf32, #tpu.memory_space<vmem>>, vector<1x128xf32>
      tpu.vector_store %arg6[%c0_18, %c0_19], %20 {strides = array<i32>} : memref<1x128xf32, #tpu.memory_space<vmem>>, vector<1x128xf32>,
    } else {
    }
    return
  }
  func.func @transform_0(%arg0: i32, %arg1: i32) -> (i32, i32) {
    %c0_i32 = arith.constant 0 : i32
    return %arg0, %arg1 : i32, i32
  }
  func.func @transform_1(%arg0: i32, %arg1: i32) -> (i32, i32) {
    %c0_i32 = arith.constant 0 : i32
    %c0_i32_0 = arith.constant 0 : i32
    return %arg1, %c0_i32 : i32, i32
  }
  func.func @transform_2(%arg0: i32, %arg1: i32) -> (i32, i32) {
    %c0_i32 = arith.constant 0 : i32
    %c0_i32_0 = arith.constant 0 : i32
    return %arg0, %c0_i32 : i32, i32
  }
  func.func @transform_3(%arg0: i32, %arg1: i32) -> (i32, i32) {
    %c0_i32 = arith.constant 0 : i32
    %c0_i32_0 = arith.constant 0 : i32
    return %arg0, %c0_i32 : i32, i32
  }
  func.func @transform_4(%arg0: i32, %arg1: i32) -> (i32, i32) {
    %c0_i32 = arith.constant 0 : i32
    %c0_i32_0 = arith.constant 0 : i32
    return %arg0, %c0_i32 : i32, i32
  }
}

module attributes {stable_mosaic.version = 11 : i64} {
  func.func @_bn_relu_kernel(%arg0: i32, %arg1: memref<512x128xbf16, #tpu.memory_space<vmem>>, %arg2: memref<1x128xf32, #tpu.memory_space<vmem>>, %arg3: memref<1x128xf32, #tpu.memory_space<vmem>>, %arg4: memref<512x128xf32, #tpu.memory_space<vmem>>) attributes {dimension_semantics = [#tpu.dimension_semantics<parallel>], iteration_bounds = array<i64: 1>, scalar_prefetch = 0 : i64, scratch_operands = 0 : i64, tpu.core_type = #tpu.core_type<tc>, window_params = [{transform_indices = @transform_0, window_bounds = array<i64: 512, 128>}, {pipeline_mode = #tpu.pipeline_mode<synchronous>, transform_indices = @transform_1, window_bounds = array<i64: 1, 128>}, {pipeline_mode = #tpu.pipeline_mode<synchronous>, transform_indices = @transform_2, window_bounds = array<i64: 1, 128>}, {transform_indices = @transform_3, window_bounds = array<i64: 512, 128>}]} {
    %c0 = arith.constant 0 : index
    %c0_0 = arith.constant 0 : index
    %0 = vector.load %arg1[%c0, %c0_0] : memref<512x128xbf16, #tpu.memory_space<vmem>>, vector<512x128xbf16>
    %1 = arith.extf %0 : vector<512x128xbf16> to vector<512x128xf32>
    %c0_1 = arith.constant 0 : index
    %c0_2 = arith.constant 0 : index
    %2 = vector.load %arg2[%c0_1, %c0_2] : memref<1x128xf32, #tpu.memory_space<vmem>>, vector<1x128xf32>
    %3 = vector.broadcast %2 : vector<1x128xf32> to vector<512x128xf32>
    %4 = arith.mulf %1, %3 : vector<512x128xf32>
    %c0_3 = arith.constant 0 : index
    %c0_4 = arith.constant 0 : index
    %5 = vector.load %arg3[%c0_3, %c0_4] : memref<1x128xf32, #tpu.memory_space<vmem>>, vector<1x128xf32>
    %6 = vector.broadcast %5 : vector<1x128xf32> to vector<512x128xf32>
    %7 = arith.addf %4, %6 : vector<512x128xf32>
    %cst = arith.constant 0.000000e+00 : f32
    %8 = vector.broadcast %cst : f32 to vector<512x128xf32>
    %9 = arith.maximumf %7, %8 : vector<512x128xf32>
    %c0_5 = arith.constant 0 : index
    %c0_6 = arith.constant 0 : index
    %10 = vector.load %arg4[%c0_5, %c0_6] : memref<512x128xf32, #tpu.memory_space<vmem>>, vector<512x128xf32>
    tpu.vector_store %arg4[%c0_5, %c0_6], %9 {strides = array<i32>} : memref<512x128xf32, #tpu.memory_space<vmem>>, vector<512x128xf32>,
    return
  }
  func.func @transform_0(%arg0: i32) -> (i32, i32) {
    %c0_i32 = arith.constant 0 : i32
    %c0_i32_0 = arith.constant 0 : i32
    return %arg0, %c0_i32 : i32, i32
  }
  func.func @transform_1(%arg0: i32) -> (i32, i32) {
    %c0_i32 = arith.constant 0 : i32
    %c0_i32_0 = arith.constant 0 : i32
    %c0_i32_1 = arith.constant 0 : i32
    return %c0_i32, %c0_i32_0 : i32, i32
  }
  func.func @transform_2(%arg0: i32) -> (i32, i32) {
    %c0_i32 = arith.constant 0 : i32
    %c0_i32_0 = arith.constant 0 : i32
    %c0_i32_1 = arith.constant 0 : i32
    return %c0_i32, %c0_i32_0 : i32, i32
  }
  func.func @transform_3(%arg0: i32) -> (i32, i32) {
    %c0_i32 = arith.constant 0 : i32
    %c0_i32_0 = arith.constant 0 : i32
    return %arg0, %c0_i32 : i32, i32
  }
}

</mosaic_0001>

<bundles_post_ra>
// kernel: conv2d_bn_relu.3
= control target key start
LH: loop header
LB: loop body
LE: loop exit
PB: predicated region body
PF: predicated region fallthrough
CT: control target
= control target key end

     0   :  { %s1023_s0 = inlined_call_operand.vmem [shape: bf16[512,128], index: 0, kind: input, shape index: {}]   ;;  %s1024_s1 = inlined_call_operand.vmem [shape: f32[1,128], index: 1, kind: input, shape index: {}]   ;;  %s1025_s2 = inlined_call_operand.vmem [shape: f32[1,128], index: 2, kind: input, shape index: {}]   ;;  %s1026_s3 = inlined_call_operand.vmem [shape: f32[512,128], index: 3, kind: output, shape index: {}]  }
   0x1   :  { %v419_v0 = vld [vmem:[%s1023_s0] sm:$0xff]   ;;  %v546_v4 = vld [vmem:[%s1023_s0 + $0x8] sm:$0xff]   ;;  %v547_v5 = vld [vmem:[%s1023_s0 + $0x10] sm:$0xff]  }
   0x2   :  { %v603_v1 = vld [vmem:[%s1024_s1] ss:$0 sm:$0xff]  ;;  %v420_v2 = vunpack.c.l.bf16 %v419_v0  ;;  %v421_v3 = vunpack.c.h.bf16 %v419_v0  ;;  %v548_v6 = vld [vmem:[%s1023_s0 + $0x18] sm:$0xff]   ;;  %v424_v8 = vunpack.c.l.bf16 %v546_v4  ;;  %v425_v9 = vunpack.c.h.bf16 %v546_v4  ;;  %v550_v33 = vld [vmem:[%s1023_s0 + $0x28] sm:$0xff]  }
   0x3   :  { %v617_v7 = vld [vmem:[%s1025_s2] ss:$0 sm:$0xff]  ;;  %v428_v10 = vunpack.c.l.bf16 %v547_v5  ;;  %v429_v11 = vunpack.c.h.bf16 %v547_v5  ;;  %v432_v14 = vunpack.c.l.bf16 %v548_v6  ;;  %v433_v15 = vunpack.c.h.bf16 %v548_v6  ;;  %v551_v34 = vld [vmem:[%s1023_s0 + $0x30] sm:$0xff]   ;;  %v552_v39 = vld [vmem:[%s1023_s0 + $0x38] sm:$0xff]  }
   0x4   :  { %v149_v12 = vmul.f32 %v420_v2, %v603_v1  ;;  %v150_v13 = vmul.f32 %v421_v3, %v603_v1  ;;  %v151_v16 = vmul.f32 %v424_v8, %v603_v1  ;;  %v152_v17 = vmul.f32 %v425_v9, %v603_v1  ;;  %v549_v28 = vld [vmem:[%s1023_s0 + $0x20] sm:$0xff]   ;;  %v554_v6 = vld [vmem:[%s1023_s0 + $0x48] sm:$0xff]   ;;  %v555_v8 = vld [vmem:[%s1023_s0 + $0x50] sm:$0xff]  }
   0x5   :  { %v153_v18 = vmul.f32 %v428_v10, %v603_v1  ;;  %v154_v19 = vmul.f32 %v429_v11, %v603_v1  ;;  %v155_v22 = vmul.f32 %v432_v14, %v603_v1  ;;  %v156_v23 = vmul.f32 %v433_v15, %v603_v1  ;;  %v553_v0 = vld [vmem:[%s1023_s0 + $0x40] sm:$0xff]  }
   0x6   :  { %v220_v20 = vadd.f32 %v617_v7, %v149_v12  ;;  %v221_v21 = vadd.f32 %v617_v7, %v150_v13  ;;  %v222_v24 = vadd.f32 %v617_v7, %v151_v16  ;;  %v223_v25 = vadd.f32 %v617_v7, %v152_v17  ;;  %v556_v13 = vld [vmem:[%s1023_s0 + $0x58] sm:$0xff]  }
   0x7   :  { %v224_v26 = vadd.f32 %v617_v7, %v153_v18  ;;  %v225_v27 = vadd.f32 %v617_v7, %v154_v19  ;;  %v226_v31 = vadd.f32 %v617_v7, %v155_v22  ;;  %v227_v32 = vadd.f32 %v617_v7, %v156_v23 }
   0x8   :  { %v284_v29 = vmax.f32 %v220_v20, 0.0  ;;  %v285_v30 = vmax.f32 %v221_v21, 0.0  ;;  %v286_v35 = vmax.f32 %v222_v24, 0.0  ;;  %v287_v36 = vmax.f32 %v223_v25, 0.0 }
   0x9   :  { %v288_v37 = vmax.f32 %v224_v26, 0.0  ;;  %v289_v38 = vmax.f32 %v225_v27, 0.0  ;;  %v290_v40 = vmax.f32 %v226_v31, 0.0  ;;  %v291_v41 = vmax.f32 %v227_v32, 0.0 }
   0xa   :  { %348 = vst [vmem:[%s1026_s3] sm:$0xff] %v284_v29  ;;  %349 = vst [vmem:[%s1026_s3 + $0x8] sm:$0xff] %v285_v30  ;;  %v436_v42 = vunpack.c.l.bf16 %v549_v28  ;;  %v437_v43 = vunpack.c.h.bf16 %v549_v28  ;;  %v440_v44 = vunpack.c.l.bf16 %v550_v33  ;;  %v441_v45 = vunpack.c.h.bf16 %v550_v33 }
   0xb   :  { %350 = vst [vmem:[%s1026_s3 + $0x10] sm:$0xff] %v286_v35  ;;  %351 = vst [vmem:[%s1026_s3 + $0x18] sm:$0xff] %v287_v36  ;;  %v444_v46 = vunpack.c.l.bf16 %v551_v34  ;;  %v445_v47 = vunpack.c.h.bf16 %v551_v34  ;;  %v448_v50 = vunpack.c.l.bf16 %v552_v39  ;;  %v449_v51 = vunpack.c.h.bf16 %v552_v39 }
   0xc   :  { %352 = vst [vmem:[%s1026_s3 + $0x20] sm:$0xff] %v288_v37  ;;  %353 = vst [vmem:[%s1026_s3 + $0x28] sm:$0xff] %v289_v38  ;;  %v157_v48 = vmul.f32 %v436_v42, %v603_v1  ;;  %v158_v49 = vmul.f32 %v437_v43, %v603_v1  ;;  %v159_v52 = vmul.f32 %v440_v44, %v603_v1  ;;  %v452_v16 = vunpack.c.l.bf16 %v553_v0  ;;  %v557_v38 = vld [vmem:[%s1023_s0 + $0x60] sm:$0xff]   ;;  %v558_v43 = vld [vmem:[%s1023_s0 + $0x68] sm:$0xff]  }
   0xd   :  { %354 = vst [vmem:[%s1026_s3 + $0x30] sm:$0xff] %v290_v40  ;;  %355 = vst [vmem:[%s1026_s3 + $0x38] sm:$0xff] %v291_v41  ;;  %v160_v53 = vmul.f32 %v441_v45, %v603_v1  ;;  %v161_v54 = vmul.f32 %v444_v46, %v603_v1  ;;  %v162_v55 = vmul.f32 %v445_v47, %v603_v1  ;;  %v453_v17 = vunpack.c.h.bf16 %v553_v0  ;;  %v559_v44 = vld [vmem:[%s1023_s0 + $0x70] sm:$0xff]  }
   0xe   :  { %v228_v56 = vadd.f32 %v617_v7, %v157_v48  ;;  %v229_v57 = vadd.f32 %v617_v7, %v158_v49  ;;  %v163_v58 = vmul.f32 %v448_v50, %v603_v1  ;;  %v164_v59 = vmul.f32 %v449_v51, %v603_v1  ;;  %v560_v49 = vld [vmem:[%s1023_s0 + $0x78] sm:$0xff]  }
   0xf   :  { %v230_v60 = vadd.f32 %v617_v7, %v159_v52  ;;  %v231_v61 = vadd.f32 %v617_v7, %v160_v53  ;;  %v232_v62 = vadd.f32 %v617_v7, %v161_v54  ;;  %v233_v63 = vadd.f32 %v617_v7, %v162_v55 }
  0x10   :  { %v292_v2 = vmax.f32 %v228_v56, 0.0  ;;  %v293_v3 = vmax.f32 %v229_v57, 0.0  ;;  %v234_v4 = vadd.f32 %v617_v7, %v163_v58  ;;  %v235_v5 = vadd.f32 %v617_v7, %v164_v59 }
  0x11   :  { %v294_v9 = vmax.f32 %v230_v60, 0.0  ;;  %v295_v10 = vmax.f32 %v231_v61, 0.0  ;;  %v296_v11 = vmax.f32 %v232_v62, 0.0  ;;  %v297_v12 = vmax.f32 %v233_v63, 0.0 }
  0x12   :  { %356 = vst [vmem:[%s1026_s3 + $0x40] sm:$0xff] %v292_v2  ;;  %357 = vst [vmem:[%s1026_s3 + $0x48] sm:$0xff] %v293_v3  ;;  %v298_v14 = vmax.f32 %v234_v4, 0.0  ;;  %v299_v15 = vmax.f32 %v235_v5, 0.0  ;;  %v456_v18 = vunpack.c.l.bf16 %v554_v6  ;;  %v457_v19 = vunpack.c.h.bf16 %v554_v6 }
  0x13   :  { %358 = vst [vmem:[%s1026_s3 + $0x50] sm:$0xff] %v294_v9  ;;  %359 = vst [vmem:[%s1026_s3 + $0x58] sm:$0xff] %v295_v10  ;;  %v460_v20 = vunpack.c.l.bf16 %v555_v8  ;;  %v461_v21 = vunpack.c.h.bf16 %v555_v8  ;;  %v165_v22 = vmul.f32 %v452_v16, %v603_v1  ;;  %v166_v23 = vmul.f32 %v453_v17, %v603_v1  ;;  %v562_v17 = vld [vmem:[%s1023_s0 + $0x88] sm:$0xff]  }
  0x14   :  { %360 = vst [vmem:[%s1026_s3 + $0x60] sm:$0xff] %v296_v11  ;;  %361 = vst [vmem:[%s1026_s3 + $0x68] sm:$0xff] %v297_v12  ;;  %v464_v24 = vunpack.c.l.bf16 %v556_v13  ;;  %v465_v25 = vunpack.c.h.bf16 %v556_v13  ;;  %v167_v26 = vmul.f32 %v456_v18, %v603_v1  ;;  %v168_v27 = vmul.f32 %v457_v19, %v603_v1  ;;  %v561_v12 = vld [vmem:[%s1023_s0 + $0x80] sm:$0xff]   ;;  %v563_v18 = vld [vmem:[%s1023_s0 + $0x90] sm:$0xff]  }
  0x15   :  { %362 = vst [vmem:[%s1026_s3 + $0x70] sm:$0xff] %v298_v14  ;;  %363 = vst [vmem:[%s1026_s3 + $0x78] sm:$0xff] %v299_v15  ;;  %v169_v28 = vmul.f32 %v460_v20, %v603_v1  ;;  %v170_v29 = vmul.f32 %v461_v21, %v603_v1  ;;  %v236_v30 = vadd.f32 %v617_v7, %v165_v22  ;;  %v468_v52 = vunpack.c.l.bf16 %v557_v38 }
  0x16   :  { %v237_v31 = vadd.f32 %v617_v7, %v166_v23  ;;  %v171_v32 = vmul.f32 %v464_v24, %v603_v1  ;;  %v172_v33 = vmul.f32 %v465_v25, %v603_v1  ;;  %v238_v34 = vadd.f32 %v617_v7, %v167_v26  ;;  %v564_v23 = vld [vmem:[%s1023_s0 + $0x98] sm:$0xff]  }
  0x17   :  { %v239_v35 = vadd.f32 %v617_v7, %v168_v27  ;;  %v240_v36 = vadd.f32 %v617_v7, %v169_v28  ;;  %v241_v37 = vadd.f32 %v617_v7, %v170_v29  ;;  %v300_v39 = vmax.f32 %v236_v30, 0.0 }
  0x18   :  { %v301_v40 = vmax.f32 %v237_v31, 0.0  ;;  %v242_v41 = vadd.f32 %v617_v7, %v171_v32  ;;  %v243_v42 = vadd.f32 %v617_v7, %v172_v33  ;;  %v302_v45 = vmax.f32 %v238_v34, 0.0 }
  0x19   :  { %v303_v46 = vmax.f32 %v239_v35, 0.0  ;;  %v304_v47 = vmax.f32 %v240_v36, 0.0  ;;  %v305_v48 = vmax.f32 %v241_v37, 0.0  ;;  %364 = vst [vmem:[%s1026_s3 + $0x80] sm:$0xff] %v300_v39  ;;  %v469_v53 = vunpack.c.h.bf16 %v557_v38 }
  0x1a   :  { %365 = vst [vmem:[%s1026_s3 + $0x88] sm:$0xff] %v301_v40  ;;  %v306_v50 = vmax.f32 %v242_v41, 0.0  ;;  %v307_v51 = vmax.f32 %v243_v42, 0.0  ;;  %366 = vst [vmem:[%s1026_s3 + $0x90] sm:$0xff] %v302_v45  ;;  %v472_v54 = vunpack.c.l.bf16 %v558_v43  ;;  %v473_v55 = vunpack.c.h.bf16 %v558_v43 }
  0x1b   :  { %367 = vst [vmem:[%s1026_s3 + $0x98] sm:$0xff] %v303_v46  ;;  %368 = vst [vmem:[%s1026_s3 + $0xa0] sm:$0xff] %v304_v47  ;;  %v476_v56 = vunpack.c.l.bf16 %v559_v44  ;;  %v477_v57 = vunpack.c.h.bf16 %v559_v44  ;;  %v173_v58 = vmul.f32 %v468_v52, %v603_v1  ;;  %v174_v59 = vmul.f32 %v469_v53, %v603_v1  ;;  %v566_v53 = vld [vmem:[%s1023_s0 + $0xa8] sm:$0xff]  }
  0x1c   :  { %369 = vst [vmem:[%s1026_s3 + $0xa8] sm:$0xff] %v305_v48  ;;  %370 = vst [vmem:[%s1026_s3 + $0xb0] sm:$0xff] %v306_v50  ;;  %v480_v60 = vunpack.c.l.bf16 %v560_v49  ;;  %v481_v61 = vunpack.c.h.bf16 %v560_v49  ;;  %v175_v62 = vmul.f32 %v472_v54, %v603_v1  ;;  %v176_v63 = vmul.f32 %v473_v55, %v603_v1  ;;  %v565_v48 = vld [vmem:[%s1023_s0 + $0xa0] sm:$0xff]   ;;  %v567_v54 = vld [vmem:[%s1023_s0 + $0xb0] sm:$0xff]  }
  0x1d   :  { %371 = vst [vmem:[%s1026_s3 + $0xb8] sm:$0xff] %v307_v51  ;;  %v177_v0 = vmul.f32 %v476_v56, %v603_v1  ;;  %v178_v2 = vmul.f32 %v477_v57, %v603_v1  ;;  %v244_v3 = vadd.f32 %v617_v7, %v173_v58  ;;  %v245_v4 = vadd.f32 %v617_v7, %v174_v59  ;;  %v568_v59 = vld [vmem:[%s1023_s0 + $0xb8] sm:$0xff]  }
  0x1e   :  { %v179_v5 = vmul.f32 %v480_v60, %v603_v1  ;;  %v180_v6 = vmul.f32 %v481_v61, %v603_v1  ;;  %v246_v8 = vadd.f32 %v617_v7, %v175_v62  ;;  %v247_v9 = vadd.f32 %v617_v7, %v176_v63 }
  0x1f   :  { %v248_v10 = vadd.f32 %v617_v7, %v177_v0  ;;  %v249_v11 = vadd.f32 %v617_v7, %v178_v2  ;;  %v308_v13 = vmax.f32 %v244_v3, 0.0  ;;  %v309_v14 = vmax.f32 %v245_v4, 0.0 }
  0x20   :  { %v250_v15 = vadd.f32 %v617_v7, %v179_v5  ;;  %v251_v16 = vadd.f32 %v617_v7, %v180_v6  ;;  %v310_v19 = vmax.f32 %v246_v8, 0.0  ;;  %v311_v20 = vmax.f32 %v247_v9, 0.0 }
  0x21   :  { %v312_v21 = vmax.f32 %v248_v10, 0.0  ;;  %v313_v22 = vmax.f32 %v249_v11, 0.0  ;;  %372 = vst [vmem:[%s1026_s3 + $0xc0] sm:$0xff] %v308_v13  ;;  %373 = vst [vmem:[%s1026_s3 + $0xc8] sm:$0xff] %v309_v14  ;;  %v484_v26 = vunpack.c.l.bf16 %v561_v12  ;;  %v485_v27 = vunpack.c.h.bf16 %v561_v12 }
  0x22   :  { %v314_v24 = vmax.f32 %v250_v15, 0.0  ;;  %v315_v25 = vmax.f32 %v251_v16, 0.0  ;;  %374 = vst [vmem:[%s1026_s3 + $0xd0] sm:$0xff] %v310_v19  ;;  %375 = vst [vmem:[%s1026_s3 + $0xd8] sm:$0xff] %v311_v20  ;;  %v488_v28 = vunpack.c.l.bf16 %v562_v17  ;;  %v489_v29 = vunpack.c.h.bf16 %v562_v17 }
  0x23   :  { %376 = vst [vmem:[%s1026_s3 + $0xe0] sm:$0xff] %v312_v21  ;;  %377 = vst [vmem:[%s1026_s3 + $0xe8] sm:$0xff] %v313_v22  ;;  %v492_v30 = vunpack.c.l.bf16 %v563_v18  ;;  %v493_v31 = vunpack.c.h.bf16 %v563_v18  ;;  %v181_v32 = vmul.f32 %v484_v26, %v603_v1  ;;  %v182_v33 = vmul.f32 %v485_v27, %v603_v1  ;;  %v569_v22 = vld [vmem:[%s1023_s0 + $0xc0] sm:$0xff]   ;;  %v570_v27 = vld [vmem:[%s1023_s0 + $0xc8] sm:$0xff]  }
  0x24   :  { %378 = vst [vmem:[%s1026_s3 + $0xf0] sm:$0xff] %v314_v24  ;;  %379 = vst [vmem:[%s1026_s3 + $0xf8] sm:$0xff] %v315_v25  ;;  %v496_v34 = vunpack.c.l.bf16 %v564_v23  ;;  %v497_v35 = vunpack.c.h.bf16 %v564_v23  ;;  %v183_v36 = vmul.f32 %v488_v28, %v603_v1  ;;  %v184_v37 = vmul.f32 %v489_v29, %v603_v1  ;;  %v571_v28 = vld [vmem:[%s1023_s0 + $0xd0] sm:$0xff]  }
  0x25   :  { %v185_v38 = vmul.f32 %v492_v30, %v603_v1  ;;  %v186_v39 = vmul.f32 %v493_v31, %v603_v1  ;;  %v252_v40 = vadd.f32 %v617_v7, %v181_v32  ;;  %v253_v41 = vadd.f32 %v617_v7, %v182_v33  ;;  %v572_v33 = vld [vmem:[%s1023_s0 + $0xd8] sm:$0xff]  }
  0x26   :  { %v187_v42 = vmul.f32 %v496_v34, %v603_v1  ;;  %v188_v43 = vmul.f32 %v497_v35, %v603_v1  ;;  %v254_v44 = vadd.f32 %v617_v7, %v183_v36  ;;  %v255_v45 = vadd.f32 %v617_v7, %v184_v37 }
  0x27   :  { %v256_v46 = vadd.f32 %v617_v7, %v185_v38  ;;  %v257_v47 = vadd.f32 %v617_v7, %v186_v39  ;;  %v316_v49 = vmax.f32 %v252_v40, 0.0  ;;  %v317_v50 = vmax.f32 %v253_v41, 0.0 }
  0x28   :  { %v258_v51 = vadd.f32 %v617_v7, %v187_v42  ;;  %v259_v52 = vadd.f32 %v617_v7, %v188_v43  ;;  %v318_v55 = vmax.f32 %v254_v44, 0.0  ;;  %v319_v56 = vmax.f32 %v255_v45, 0.0 }
  0x29   :  { %v320_v57 = vmax.f32 %v256_v46, 0.0  ;;  %v321_v58 = vmax.f32 %v257_v47, 0.0  ;;  %380 = vst [vmem:[%s1026_s3 + $0x100] sm:$0xff] %v316_v49  ;;  %381 = vst [vmem:[%s1026_s3 + $0x108] sm:$0xff] %v317_v50  ;;  %v500_v62 = vunpack.c.l.bf16 %v565_v48  ;;  %v501_v63 = vunpack.c.h.bf16 %v565_v48 }
  0x2a   :  { %v322_v60 = vmax.f32 %v258_v51, 0.0  ;;  %v323_v61 = vmax.f32 %v259_v52, 0.0  ;;  %382 = vst [vmem:[%s1026_s3 + $0x110] sm:$0xff] %v318_v55  ;;  %383 = vst [vmem:[%s1026_s3 + $0x118] sm:$0xff] %v319_v56  ;;  %v504_v0 = vunpack.c.l.bf16 %v566_v53  ;;  %v505_v2 = vunpack.c.h.bf16 %v566_v53 }
  0x2b   :  { %384 = vst [vmem:[%s1026_s3 + $0x120] sm:$0xff] %v320_v57  ;;  %385 = vst [vmem:[%s1026_s3 + $0x128] sm:$0xff] %v321_v58  ;;  %v508_v3 = vunpack.c.l.bf16 %v567_v54  ;;  %v509_v4 = vunpack.c.h.bf16 %v567_v54  ;;  %v189_v5 = vmul.f32 %v500_v62, %v603_v1  ;;  %v190_v6 = vmul.f32 %v501_v63, %v603_v1  ;;  %v573_v58 = vld [vmem:[%s1023_s0 + $0xe0] sm:$0xff]   ;;  %v574_v63 = vld [vmem:[%s1023_s0 + $0xe8] sm:$0xff]  }
  0x2c   :  { %386 = vst [vmem:[%s1026_s3 + $0x130] sm:$0xff] %v322_v60  ;;  %387 = vst [vmem:[%s1026_s3 + $0x138] sm:$0xff] %v323_v61  ;;  %v512_v8 = vunpack.c.l.bf16 %v568_v59  ;;  %v513_v9 = vunpack.c.h.bf16 %v568_v59  ;;  %v191_v10 = vmul.f32 %v504_v0, %v603_v1  ;;  %v192_v11 = vmul.f32 %v505_v2, %v603_v1  ;;  %v575_v0 = vld [vmem:[%s1023_s0 + $0xf0] sm:$0xff]  }
  0x2d   :  { %v193_v12 = vmul.f32 %v508_v3, %v603_v1  ;;  %v194_v13 = vmul.f32 %v509_v4, %v603_v1  ;;  %v260_v14 = vadd.f32 %v617_v7, %v189_v5  ;;  %v261_v15 = vadd.f32 %v617_v7, %v190_v6  ;;  %v576_v6 = vld [vmem:[%s1023_s0 + $0xf8] sm:$0xff]  }
  0x2e   :  { %v195_v16 = vmul.f32 %v512_v8, %v603_v1  ;;  %v196_v17 = vmul.f32 %v513_v9, %v603_v1  ;;  %v262_v18 = vadd.f32 %v617_v7, %v191_v10  ;;  %v263_v19 = vadd.f32 %v617_v7, %v192_v11 }
  0x2f   :  { %v264_v20 = vadd.f32 %v617_v7, %v193_v12  ;;  %v265_v21 = vadd.f32 %v617_v7, %v194_v13  ;;  %v324_v23 = vmax.f32 %v260_v14, 0.0  ;;  %v325_v24 = vmax.f32 %v261_v15, 0.0 }
  0x30   :  { %v266_v25 = vadd.f32 %v617_v7, %v195_v16  ;;  %v267_v26 = vadd.f32 %v617_v7, %v196_v17  ;;  %v326_v29 = vmax.f32 %v262_v18, 0.0  ;;  %v327_v30 = vmax.f32 %v263_v19, 0.0 }
  0x31   :  { %v328_v31 = vmax.f32 %v264_v20, 0.0  ;;  %v329_v32 = vmax.f32 %v265_v21, 0.0  ;;  %388 = vst [vmem:[%s1026_s3 + $0x140] sm:$0xff] %v324_v23  ;;  %389 = vst [vmem:[%s1026_s3 + $0x148] sm:$0xff] %v325_v24  ;;  %v516_v36 = vunpack.c.l.bf16 %v569_v22  ;;  %v517_v37 = vunpack.c.h.bf16 %v569_v22 }
  0x32   :  { %v330_v34 = vmax.f32 %v266_v25, 0.0  ;;  %v331_v35 = vmax.f32 %v267_v26, 0.0  ;;  %390 = vst [vmem:[%s1026_s3 + $0x150] sm:$0xff] %v326_v29  ;;  %391 = vst [vmem:[%s1026_s3 + $0x158] sm:$0xff] %v327_v30  ;;  %v520_v38 = vunpack.c.l.bf16 %v570_v27  ;;  %v521_v39 = vunpack.c.h.bf16 %v570_v27 }
  0x33   :  { %392 = vst [vmem:[%s1026_s3 + $0x160] sm:$0xff] %v328_v31  ;;  %393 = vst [vmem:[%s1026_s3 + $0x168] sm:$0xff] %v329_v32  ;;  %v524_v40 = vunpack.c.l.bf16 %v571_v28  ;;  %v525_v41 = vunpack.c.h.bf16 %v571_v28  ;;  %v197_v42 = vmul.f32 %v516_v36, %v603_v1  ;;  %v198_v43 = vmul.f32 %v517_v37, %v603_v1 }
  0x34   :  { %394 = vst [vmem:[%s1026_s3 + $0x170] sm:$0xff] %v330_v34  ;;  %395 = vst [vmem:[%s1026_s3 + $0x178] sm:$0xff] %v331_v35  ;;  %v528_v44 = vunpack.c.l.bf16 %v572_v33  ;;  %v529_v45 = vunpack.c.h.bf16 %v572_v33  ;;  %v199_v46 = vmul.f32 %v520_v38, %v603_v1  ;;  %v200_v47 = vmul.f32 %v521_v39, %v603_v1 }
  0x35   :  { %v201_v48 = vmul.f32 %v524_v40, %v603_v1  ;;  %v202_v49 = vmul.f32 %v525_v41, %v603_v1  ;;  %v268_v50 = vadd.f32 %v617_v7, %v197_v42  ;;  %v269_v51 = vadd.f32 %v617_v7, %v198_v43 }
  0x36   :  { %v203_v52 = vmul.f32 %v528_v44, %v603_v1  ;;  %v204_v53 = vmul.f32 %v529_v45, %v603_v1  ;;  %v270_v54 = vadd.f32 %v617_v7, %v199_v46  ;;  %v271_v55 = vadd.f32 %v617_v7, %v200_v47 }
  0x37   :  { %v272_v56 = vadd.f32 %v617_v7, %v201_v48  ;;  %v273_v57 = vadd.f32 %v617_v7, %v202_v49  ;;  %v332_v59 = vmax.f32 %v268_v50, 0.0  ;;  %v333_v60 = vmax.f32 %v269_v51, 0.0 }
  0x38   :  { %v274_v61 = vadd.f32 %v617_v7, %v203_v52  ;;  %v275_v62 = vadd.f32 %v617_v7, %v204_v53  ;;  %v334_v2 = vmax.f32 %v270_v54, 0.0  ;;  %v335_v3 = vmax.f32 %v271_v55, 0.0 }
  0x39   :  { %v336_v4 = vmax.f32 %v272_v56, 0.0  ;;  %v337_v5 = vmax.f32 %v273_v57, 0.0  ;;  %396 = vst [vmem:[%s1026_s3 + $0x180] sm:$0xff] %v332_v59  ;;  %397 = vst [vmem:[%s1026_s3 + $0x188] sm:$0xff] %v333_v60  ;;  %v532_v10 = vunpack.c.l.bf16 %v573_v58  ;;  %v533_v11 = vunpack.c.h.bf16 %v573_v58 }
  0x3a   :  { %v338_v8 = vmax.f32 %v274_v61, 0.0  ;;  %v339_v9 = vmax.f32 %v275_v62, 0.0  ;;  %398 = vst [vmem:[%s1026_s3 + $0x190] sm:$0xff] %v334_v2  ;;  %399 = vst [vmem:[%s1026_s3 + $0x198] sm:$0xff] %v335_v3  ;;  %v536_v12 = vunpack.c.l.bf16 %v574_v63  ;;  %v537_v13 = vunpack.c.h.bf16 %v574_v63 }
  0x3b   :  { %400 = vst [vmem:[%s1026_s3 + $0x1a0] sm:$0xff] %v336_v4  ;;  %401 = vst [vmem:[%s1026_s3 + $0x1a8] sm:$0xff] %v337_v5  ;;  %v540_v14 = vunpack.c.l.bf16 %v575_v0  ;;  %v541_v15 = vunpack.c.h.bf16 %v575_v0  ;;  %v205_v16 = vmul.f32 %v532_v10, %v603_v1  ;;  %v206_v17 = vmul.f32 %v533_v11, %v603_v1 }
  0x3c   :  { %402 = vst [vmem:[%s1026_s3 + $0x1b0] sm:$0xff] %v338_v8  ;;  %403 = vst [vmem:[%s1026_s3 + $0x1b8] sm:$0xff] %v339_v9  ;;  %v544_v18 = vunpack.c.l.bf16 %v576_v6  ;;  %v545_v19 = vunpack.c.h.bf16 %v576_v6  ;;  %v207_v20 = vmul.f32 %v536_v12, %v603_v1  ;;  %v208_v21 = vmul.f32 %v537_v13, %v603_v1 }
  0x3d   :  { %v209_v22 = vmul.f32 %v540_v14, %v603_v1  ;;  %v210_v23 = vmul.f32 %v541_v15, %v603_v1  ;;  %v276_v24 = vadd.f32 %v617_v7, %v205_v16  ;;  %v277_v25 = vadd.f32 %v617_v7, %v206_v17 }
  0x3e   :  { %v211_v26 = vmul.f32 %v544_v18, %v603_v1  ;;  %v212_v27 = vmul.f32 %v545_v19, %v603_v1  ;;  %v278_v28 = vadd.f32 %v617_v7, %v207_v20  ;;  %v279_v29 = vadd.f32 %v617_v7, %v208_v21 }
  0x3f   :  { %v280_v30 = vadd.f32 %v617_v7, %v209_v22  ;;  %v281_v31 = vadd.f32 %v617_v7, %v210_v23  ;;  %v340_v32 = vmax.f32 %v276_v24, 0.0  ;;  %v341_v33 = vmax.f32 %v277_v25, 0.0 }
  0x40   :  { %v282_v34 = vadd.f32 %v617_v7, %v211_v26  ;;  %v283_v35 = vadd.f32 %v617_v7, %v212_v27  ;;  %v342_v36 = vmax.f32 %v278_v28, 0.0  ;;  %v343_v37 = vmax.f32 %v279_v29, 0.0 }
  0x41   :  { %v344_v38 = vmax.f32 %v280_v30, 0.0  ;;  %v345_v39 = vmax.f32 %v281_v31, 0.0  ;;  %404 = vst [vmem:[%s1026_s3 + $0x1c0] sm:$0xff] %v340_v32  ;;  %405 = vst [vmem:[%s1026_s3 + $0x1c8] sm:$0xff] %v341_v33 }
  0x42   :  { %v346_v1 = vmax.f32 %v282_v34, 0.0  ;;  %v347_v40 = vmax.f32 %v283_v35, 0.0  ;;  %406 = vst [vmem:[%s1026_s3 + $0x1d0] sm:$0xff] %v342_v36  ;;  %407 = vst [vmem:[%s1026_s3 + $0x1d8] sm:$0xff] %v343_v37 }
  0x43   :  { %408 = vst [vmem:[%s1026_s3 + $0x1e0] sm:$0xff] %v344_v38  ;;  %409 = vst [vmem:[%s1026_s3 + $0x1e8] sm:$0xff] %v345_v39 }
  0x44   :  { %410 = vst [vmem:[%s1026_s3 + $0x1f0] sm:$0xff] %v346_v1  ;;  %411 = vst [vmem:[%s1026_s3 + $0x1f8] sm:$0xff] %v347_v40 }

// kernel: conv2d_bn_relu.2
= control target key start
LH: loop header
LB: loop body
LE: loop exit
PB: predicated region body
PF: predicated region fallthrough
CT: control target
= control target key end

     0   :  { %s2461_s1 = inlined_call_operand.vmem [shape: bf16[128,128], index: 1, kind: input, shape index: {}]   ;;  %s2462_s0 = inlined_call_operand.vmem [shape: bf16[512,128], index: 0, kind: input, shape index: {}]   ;;  %s2463_s2 = inlined_call_operand.vmem [shape: bf16[512,128], index: 2, kind: output, shape index: {0}]   ;;  %s2464_s3 = inlined_call_operand.vmem [shape: f32[1,128], index: 3, kind: output, shape index: {1}]   ;;  %s2465_s4 = inlined_call_operand.vmem [shape: f32[1,128], index: 4, kind: output, shape index: {2}]  }
   0x1   :  { %v1982_v0 = vld [vmem:[%s2461_s1] sm:$0xff]   ;;  %v1983_v1 = vld [vmem:[%s2461_s1 + $0x8] sm:$0xff]   ;;  %v1984_v2 = vld [vmem:[%s2461_s1 + $0x10] sm:$0xff]  }
   0x2   :  { %1886 = vmatprep.subr.bf16.mxu0 %v1982_v0  ;;  %1966 = vmatprep.subr.bf16.mxu1 %v1982_v0  ;;  %v1985_v3 = vld [vmem:[%s2461_s1 + $0x18] sm:$0xff]   ;;  %v1990_v4 = vld [vmem:[%s2462_s0] sm:$0xff]   ;;  %v1987_v6 = vld [vmem:[%s2461_s1 + $0x28] sm:$0xff]  }
   0x3   :  { %1887 = vmatpush3.bf16.msra.mxu0 %v1982_v0  ;;  %1974 = vmatpush3.bf16.msra.mxu1 %v1982_v0  ;;  %v1986_v5 = vld [vmem:[%s2461_s1 + $0x20] sm:$0xff]   ;;  %v1988_v7 = vld [vmem:[%s2461_s1 + $0x30] sm:$0xff]   ;;  %v1989_v8 = vld [vmem:[%s2461_s1 + $0x38] sm:$0xff]  }
   0x4   :  { %1888 = vmatprep.subr.bf16.mxu0 %v1983_v1  ;;  %1967 = vmatprep.subr.bf16.mxu1 %v1983_v1  ;;  %v2006_v9 = vld [vmem:[%s2462_s0 + $0x80] sm:$0xff]   ;;  %v1991_v10 = vld [vmem:[%s2462_s0 + $0x8] sm:$0xff]   ;;  %v1992_v11 = vld [vmem:[%s2462_s0 + $0x10] sm:$0xff]  }
   0x5   :  { %1902 = vmatprep.mubr.bf16.mxu0 %v1990_v4  ;;  %1934 = vmatprep.mubr.bf16.mxu1 %v2006_v9  ;;  %v2007_v12 = vld [vmem:[%s2462_s0 + $0x88] sm:$0xff]   ;;  %v2008_v13 = vld [vmem:[%s2462_s0 + $0x90] sm:$0xff]   ;;  %v1993_v14 = vld [vmem:[%s2462_s0 + $0x18] sm:$0xff]  }
   0x6   :  { %v1994_v15 = vld [vmem:[%s2462_s0 + $0x20] sm:$0xff]   ;;  %v2009_v16 = vld [vmem:[%s2462_s0 + $0x98] sm:$0xff]   ;;  %v1995_v18 = vld [vmem:[%s2462_s0 + $0x28] sm:$0xff]  }
   0x7   :  { %1889 = vmatpush3.bf16.msra.mxu0 %v1983_v1  ;;  %1975 = vmatpush3.bf16.msra.mxu1 %v1983_v1  ;;  %v2010_v17 = vld [vmem:[%s2462_s0 + $0xa0] sm:$0xff]   ;;  %v2011_v19 = vld [vmem:[%s2462_s0 + $0xa8] sm:$0xff]   ;;  %v1996_v20 = vld [vmem:[%s2462_s0 + $0x30] sm:$0xff]  }
   0x8   :  { %1890 = vmatprep.subr.bf16.mxu0 %v1984_v2  ;;  %1968 = vmatprep.subr.bf16.mxu1 %v1984_v2  ;;  %v2012_v21 = vld [vmem:[%s2462_s0 + $0xb0] sm:$0xff]   ;;  %v1997_v22 = vld [vmem:[%s2462_s0 + $0x38] sm:$0xff]   ;;  %v1998_v24 = vld [vmem:[%s2462_s0 + $0x40] sm:$0xff]  }
   0x9   :  { %v2013_v23 = vld [vmem:[%s2462_s0 + $0xb8] sm:$0xff]   ;;  %v2014_v25 = vld [vmem:[%s2462_s0 + $0xc0] sm:$0xff]   ;;  %v1999_v26 = vld [vmem:[%s2462_s0 + $0x48] sm:$0xff]  }
   0xa   :  { %v2015_v27 = vld [vmem:[%s2462_s0 + $0xc8] sm:$0xff]   ;;  %v2000_v28 = vld [vmem:[%s2462_s0 + $0x50] sm:$0xff]   ;;  %v2001_v30 = vld [vmem:[%s2462_s0 + $0x58] sm:$0xff]  }
   0xb   :  { %1891 = vmatpush3.bf16.msra.mxu0 %v1984_v2  ;;  %1976 = vmatpush3.bf16.msra.mxu1 %v1984_v2  ;;  %v2016_v29 = vld [vmem:[%s2462_s0 + $0xd0] sm:$0xff]   ;;  %v2017_v31 = vld [vmem:[%s2462_s0 + $0xd8] sm:$0xff]   ;;  %v2002_v32 = vld [vmem:[%s2462_s0 + $0x60] sm:$0xff]  }
   0xc   :  { %1892 = vmatprep.subr.bf16.mxu0 %v1985_v3  ;;  %1969 = vmatprep.subr.bf16.mxu1 %v1985_v3  ;;  %v2018_v33 = vld [vmem:[%s2462_s0 + $0xe0] sm:$0xff]   ;;  %v2003_v34 = vld [vmem:[%s2462_s0 + $0x68] sm:$0xff]   ;;  %v2004_v36 = vld [vmem:[%s2462_s0 + $0x70] sm:$0xff]  }
   0xd   :  { %v2019_v35 = vld [vmem:[%s2462_s0 + $0xe8] sm:$0xff]   ;;  %v2020_v37 = vld [vmem:[%s2462_s0 + $0xf0] sm:$0xff]   ;;  %v2005_v38 = vld [vmem:[%s2462_s0 + $0x78] sm:$0xff]  }
   0xe   :  { %v2021_v39 = vld [vmem:[%s2462_s0 + $0xf8] sm:$0xff]  }
   0xf   :  { %1893 = vmatpush3.bf16.msra.mxu0 %v1985_v3  ;;  %1977 = vmatpush3.bf16.msra.mxu1 %v1985_v3 }
  0x10   :  { %1894 = vmatprep.subr.bf16.mxu0 %v1986_v5  ;;  %1970 = vmatprep.subr.bf16.mxu1 %v1986_v5 }
  0x13   :  { %1895 = vmatpush3.bf16.msra.mxu0 %v1986_v5  ;;  %1978 = vmatpush3.bf16.msra.mxu1 %v1986_v5 }
  0x14   :  { %1896 = vmatprep.subr.bf16.mxu0 %v1987_v6  ;;  %1971 = vmatprep.subr.bf16.mxu1 %v1987_v6 }
  0x17   :  { %1897 = vmatpush3.bf16.msra.mxu0 %v1987_v6  ;;  %1979 = vmatpush3.bf16.msra.mxu1 %v1987_v6 }
  0x18   :  { %1898 = vmatprep.subr.bf16.mxu0 %v1988_v7  ;;  %1972 = vmatprep.subr.bf16.mxu1 %v1988_v7 }
  0x1b   :  { %1899 = vmatpush3.bf16.msra.mxu0 %v1988_v7  ;;  %1980 = vmatpush3.bf16.msra.mxu1 %v1988_v7 }
  0x1c   :  { %1900 = vmatprep.subr.bf16.mxu0 %v1989_v8  ;;  %1973 = vmatprep.subr.bf16.mxu1 %v1989_v8 }
  0x1f   :  { %1901 = vmatpush3.bf16.msra.mxu0 %v1989_v8  ;;  %1981 = vmatpush3.bf16.msra.mxu1 %v1989_v8 }
  0x22   :  { %1903 = vmatmul.mubr.bf16.vlgmr.msra.gmra.mrb[0].mxu0 %v1991_v10  ;;  %1935 = vmatmul.mubr.bf16.vlgmr.msra.gmra.mrb[0].mxu1 %v2007_v12 }
  0x23   :  { %1906 = vmatprep.mubr.bf16.mxu0 %v1992_v11  ;;  %1938 = vmatprep.mubr.bf16.mxu1 %v2008_v13 }
  0x2a   :  { %1907 = vmatmul.mubr.bf16.gmra.mrb[4].mxu0 %v1993_v14  ;;  %1939 = vmatmul.mubr.bf16.gmra.mrb[4].mxu1 %v2009_v16 }
  0x2b   :  { %1910 = vmatprep.mubr.bf16.mxu0 %v1994_v15  ;;  %1942 = vmatprep.mubr.bf16.mxu1 %v2010_v17 }
  0x32   :  { %1911 = vmatmul.mubr.bf16.gmra.mrb[8].mxu0 %v1995_v18  ;;  %1943 = vmatmul.mubr.bf16.gmra.mrb[8].mxu1 %v2011_v19 }
  0x33   :  { %1914 = vmatprep.mubr.bf16.mxu0 %v1996_v20  ;;  %1946 = vmatprep.mubr.bf16.mxu1 %v2012_v21 }
  0x3a   :  { %1915 = vmatmul.mubr.bf16.gmra.mrb[12].mxu0 %v1997_v22  ;;  %1947 = vmatmul.mubr.bf16.gmra.mrb[12].mxu1 %v2013_v23 }
  0x3b   :  { %1918 = vmatprep.mubr.bf16.mxu0 %v1998_v24  ;;  %1950 = vmatprep.mubr.bf16.mxu1 %v2014_v25 }
  0x42   :  { %1919 = vmatmul.mubr.bf16.gmra.mrb[16].mxu0 %v1999_v26  ;;  %1951 = vmatmul.mubr.bf16.gmra.mrb[16].mxu1 %v2015_v27 }
  0x43   :  { %1922 = vmatprep.mubr.bf16.mxu0 %v2000_v28  ;;  %1954 = vmatprep.mubr.bf16.mxu1 %v2016_v29 }
  0x4a   :  { %1923 = vmatmul.mubr.bf16.gmra.mrb[20].mxu0 %v2001_v30  ;;  %1955 = vmatmul.mubr.bf16.gmra.mrb[20].mxu1 %v2017_v31 }
  0x4b   :  { %1926 = vmatprep.mubr.bf16.mxu0 %v2002_v32  ;;  %1958 = vmatprep.mubr.bf16.mxu1 %v2018_v33 }
  0x52   :  { %1927 = vmatmul.mubr.bf16.gmra.mrb[24].mxu0 %v2003_v34  ;;  %1959 = vmatmul.mubr.bf16.gmra.mrb[24].mxu1 %v2019_v35 }
  0x53   :  { %1930 = vmatprep.mubr.bf16.mxu0 %v2004_v36  ;;  %1962 = vmatprep.mubr.bf16.mxu1 %v2020_v37 }
  0x5a   :  { %1931 = vmatmul.mubr.bf16.gmra.mrb[28].mxu0 %v2005_v38  ;;  %1963 = vmatmul.mubr.bf16.gmra.mrb[28].mxu1 %v2021_v39 }
  0xf5   :  { %v1904_v40 = vpop.f32.mrb[0].mxu0  ;;  %v2167_v41 = vpop.f32.mrb[0].mxu1 }
  0xf6   :  { %v501_v42 = vpop.f32.mrb[1].mxu0  ;;  %v2169_v43 = vpop.f32.mrb[1].mxu1  ;;  %v1343_v55 = vmul.f32 %v1904_v40, %v1904_v40 }
  0xf7   :  { %v1905_v44 = vpop.f32.mrb[2].mxu0  ;;  %v2171_v45 = vpop.f32.mrb[2].mxu1  ;;  %v1341_v46 = vmul.f32 %v501_v42, %v501_v42 }
  0xf8   :  { %v1663_v47 = vpack.c.bf16 %v1905_v44, %v1904_v40  ;;  %v504_v48 = vpop.f32.mrb[3].mxu0  ;;  %v1743_v49 = vpack.c.bf16 %v2171_v45, %v2167_v41  ;;  %v2175_v50 = vpop.f32.mrb[3].mxu1  ;;  %v1344_v58 = vmul.f32 %v1905_v44, %v1905_v44 }
  0xf9   :  { %v1658_v51 = vpack.c.bf16 %v504_v48, %v501_v42  ;;  %v1271_v52 = vadd.f32 %v504_v48, %v501_v42  ;;  %v1342_v53 = vmul.f32 %v504_v48, %v504_v48  ;;  %v1738_v54 = vpack.c.bf16 %v2175_v50, %v2169_v43 }
  0xfa   :  { %1815 = vst [vmem:[%s2463_s2 + $0x8] sm:$0xff] %v1663_v47   ;;  %1831 = vst [vmem:[%s2463_s2 + $0x88] sm:$0xff] %v1743_v49  }
  0xfb   :  { %1659 = vst [vmem:[%s2463_s2] sm:$0xff] %v1658_v51   ;;  %v1272_v56 = vadd.f32 %v1904_v40, %v1271_v52  ;;  %v1405_v57 = vadd.f32 %v1342_v53, %v1341_v46  ;;  %1830 = vst [vmem:[%s2463_s2 + $0x80] sm:$0xff] %v1738_v54  }
  0xfd   :  { %v1406_v59 = vadd.f32 %v1405_v57, %v1343_v55  ;;  %v1908_v60 = vpop.f32.mrb[4].mxu0  ;;  %v1273_v61 = vadd.f32 %v1905_v44, %v1272_v56  ;;  %v2191_v62 = vpop.f32.mrb[4].mxu1 }
  0xfe   :  { %v517_v63 = vpop.f32.mrb[5].mxu0  ;;  %v2193_v0 = vpop.f32.mrb[5].mxu1  ;;  %v1347_v15 = vmul.f32 %v1908_v60, %v1908_v60 }
  0xff   :  { %v1274_v1 = vadd.f32 %v1273_v61, %v517_v63  ;;  %v1345_v2 = vmul.f32 %v517_v63, %v517_v63  ;;  %v1407_v3 = vadd.f32 %v1406_v59, %v1344_v58  ;;  %v1909_v4 = vpop.f32.mrb[6].mxu0  ;;  %v2195_v5 = vpop.f32.mrb[6].mxu1 }
 0x100   :  { %v1673_v6 = vpack.c.bf16 %v1909_v4, %v1908_v60  ;;  %v520_v7 = vpop.f32.mrb[7].mxu0  ;;  %v1753_v8 = vpack.c.bf16 %v2195_v5, %v2191_v62  ;;  %v2199_v9 = vpop.f32.mrb[7].mxu1  ;;  %v1348_v18 = vmul.f32 %v1909_v4, %v1909_v4 }
 0x101   :  { %v1408_v10 = vadd.f32 %v1407_v3, %v1345_v2  ;;  %v1668_v11 = vpack.c.bf16 %v520_v7, %v517_v63  ;;  %v1275_v12 = vadd.f32 %v1274_v1, %v520_v7  ;;  %v1346_v13 = vmul.f32 %v520_v7, %v520_v7 }
 0x102   :  { %1817 = vst [vmem:[%s2463_s2 + $0x18] sm:$0xff] %v1673_v6   ;;  %1833 = vst [vmem:[%s2463_s2 + $0x98] sm:$0xff] %v1753_v8   ;;  %v1748_v14 = vpack.c.bf16 %v2199_v9, %v2193_v0 }
 0x103   :  { %1816 = vst [vmem:[%s2463_s2 + $0x10] sm:$0xff] %v1668_v11   ;;  %v1276_v16 = vadd.f32 %v1908_v60, %v1275_v12  ;;  %v1409_v17 = vadd.f32 %v1408_v10, %v1346_v13 }
 0x104   :  { %1832 = vst [vmem:[%s2463_s2 + $0x90] sm:$0xff] %v1748_v14  }
 0x105   :  { %v1410_v19 = vadd.f32 %v1409_v17, %v1347_v15  ;;  %v1912_v20 = vpop.f32.mrb[8].mxu0  ;;  %v1277_v21 = vadd.f32 %v1909_v4, %v1276_v16  ;;  %v2215_v22 = vpop.f32.mrb[8].mxu1 }
 0x106   :  { %v533_v23 = vpop.f32.mrb[9].mxu0  ;;  %v2217_v24 = vpop.f32.mrb[9].mxu1  ;;  %v1351_v39 = vmul.f32 %v1912_v20, %v1912_v20 }
 0x107   :  { %v1278_v25 = vadd.f32 %v1277_v21, %v533_v23  ;;  %v1349_v26 = vmul.f32 %v533_v23, %v533_v23  ;;  %v1411_v27 = vadd.f32 %v1410_v19, %v1348_v18  ;;  %v1913_v28 = vpop.f32.mrb[10].mxu0  ;;  %v2219_v29 = vpop.f32.mrb[10].mxu1 }
 0x108   :  { %v1683_v30 = vpack.c.bf16 %v1913_v28, %v1912_v20  ;;  %v536_v31 = vpop.f32.mrb[11].mxu0  ;;  %v1763_v32 = vpack.c.bf16 %v2219_v29, %v2215_v22  ;;  %v2223_v33 = vpop.f32.mrb[11].mxu1  ;;  %v1352_v44 = vmul.f32 %v1913_v28, %v1913_v28 }
 0x109   :  { %v1412_v34 = vadd.f32 %v1411_v27, %v1349_v26  ;;  %v1678_v35 = vpack.c.bf16 %v536_v31, %v533_v23  ;;  %v1279_v36 = vadd.f32 %v1278_v25, %v536_v31  ;;  %v1350_v37 = vmul.f32 %v536_v31, %v536_v31 }
 0x10a   :  { %1819 = vst [vmem:[%s2463_s2 + $0x28] sm:$0xff] %v1683_v30   ;;  %1835 = vst [vmem:[%s2463_s2 + $0xa8] sm:$0xff] %v1763_v32   ;;  %v1758_v38 = vpack.c.bf16 %v2223_v33, %v2217_v24 }
 0x10b   :  { %1818 = vst [vmem:[%s2463_s2 + $0x20] sm:$0xff] %v1678_v35   ;;  %v1280_v40 = vadd.f32 %v1912_v20, %v1279_v36  ;;  %v1413_v42 = vadd.f32 %v1412_v34, %v1350_v37 }
 0x10c   :  { %1834 = vst [vmem:[%s2463_s2 + $0xa0] sm:$0xff] %v1758_v38  }
 0x10d   :  { %v1414_v46 = vadd.f32 %v1413_v42, %v1351_v39  ;;  %v1916_v47 = vpop.f32.mrb[12].mxu0  ;;  %v1281_v48 = vadd.f32 %v1913_v28, %v1280_v40  ;;  %v2239_v49 = vpop.f32.mrb[12].mxu1 }
 0x10e   :  { %v549_v51 = vpop.f32.mrb[13].mxu0  ;;  %v2241_v52 = vpop.f32.mrb[13].mxu1  ;;  %v1355_v6 = vmul.f32 %v1916_v47, %v1916_v47 }
 0x10f   :  { %v1282_v53 = vadd.f32 %v1281_v48, %v549_v51  ;;  %v1353_v54 = vmul.f32 %v549_v51, %v549_v51  ;;  %v1415_v55 = vadd.f32 %v1414_v46, %v1352_v44  ;;  %v1917_v56 = vpop.f32.mrb[14].mxu0  ;;  %v2243_v57 = vpop.f32.mrb[14].mxu1 }
 0x110   :  { %v1693_v58 = vpack.c.bf16 %v1917_v56, %v1916_v47  ;;  %v552_v59 = vpop.f32.mrb[15].mxu0  ;;  %v1773_v60 = vpack.c.bf16 %v2243_v57, %v2239_v49  ;;  %v2247_v61 = vpop.f32.mrb[15].mxu1  ;;  %v1356_v10 = vmul.f32 %v1917_v56, %v1917_v56 }
 0x111   :  { %v1416_v63 = vadd.f32 %v1415_v55, %v1353_v54  ;;  %v1688_v1 = vpack.c.bf16 %v552_v59, %v549_v51  ;;  %v1283_v2 = vadd.f32 %v1282_v53, %v552_v59  ;;  %v1354_v3 = vmul.f32 %v552_v59, %v552_v59 }
 0x112   :  { %1821 = vst [vmem:[%s2463_s2 + $0x38] sm:$0xff] %v1693_v58   ;;  %1837 = vst [vmem:[%s2463_s2 + $0xb8] sm:$0xff] %v1773_v60   ;;  %v1768_v4 = vpack.c.bf16 %v2247_v61, %v2241_v52 }
 0x113   :  { %1820 = vst [vmem:[%s2463_s2 + $0x30] sm:$0xff] %v1688_v1   ;;  %v1284_v7 = vadd.f32 %v1916_v47, %v1283_v2  ;;  %v1417_v8 = vadd.f32 %v1416_v63, %v1354_v3 }
 0x114   :  { %1836 = vst [vmem:[%s2463_s2 + $0xb0] sm:$0xff] %v1768_v4  }
 0x115   :  { %v1418_v11 = vadd.f32 %v1417_v8, %v1355_v6  ;;  %v1920_v12 = vpop.f32.mrb[16].mxu0  ;;  %v1285_v13 = vadd.f32 %v1917_v56, %v1284_v7  ;;  %v2263_v14 = vpop.f32.mrb[16].mxu1 }
 0x116   :  { %v565_v15 = vpop.f32.mrb[17].mxu0  ;;  %v2265_v16 = vpop.f32.mrb[17].mxu1  ;;  %v1359_v35 = vmul.f32 %v1920_v12, %v1920_v12 }
 0x117   :  { %v1286_v17 = vadd.f32 %v1285_v13, %v565_v15  ;;  %v1357_v18 = vmul.f32 %v565_v15, %v565_v15  ;;  %v1419_v19 = vadd.f32 %v1418_v11, %v1356_v10  ;;  %v1921_v20 = vpop.f32.mrb[18].mxu0  ;;  %v2267_v21 = vpop.f32.mrb[18].mxu1 }
 0x118   :  { %v1703_v23 = vpack.c.bf16 %v1921_v20, %v1920_v12  ;;  %v568_v25 = vpop.f32.mrb[19].mxu0  ;;  %v1783_v26 = vpack.c.bf16 %v2267_v21, %v2263_v14  ;;  %v2271_v27 = vpop.f32.mrb[19].mxu1  ;;  %v1360_v38 = vmul.f32 %v1921_v20, %v1921_v20 }
 0x119   :  { %v1420_v28 = vadd.f32 %v1419_v19, %v1357_v18  ;;  %v1698_v30 = vpack.c.bf16 %v568_v25, %v565_v15  ;;  %v1287_v31 = vadd.f32 %v1286_v17, %v568_v25  ;;  %v1358_v32 = vmul.f32 %v568_v25, %v568_v25 }
 0x11a   :  { %1823 = vst [vmem:[%s2463_s2 + $0x48] sm:$0xff] %v1703_v23   ;;  %1839 = vst [vmem:[%s2463_s2 + $0xc8] sm:$0xff] %v1783_v26   ;;  %v1778_v34 = vpack.c.bf16 %v2271_v27, %v2265_v16 }
 0x11b   :  { %1822 = vst [vmem:[%s2463_s2 + $0x40] sm:$0xff] %v1698_v30   ;;  %v1288_v36 = vadd.f32 %v1920_v12, %v1287_v31  ;;  %v1421_v37 = vadd.f32 %v1420_v28, %v1358_v32 }
 0x11c   :  { %1838 = vst [vmem:[%s2463_s2 + $0xc0] sm:$0xff] %v1778_v34  }
 0x11d   :  { %v1422_v39 = vadd.f32 %v1421_v37, %v1359_v35  ;;  %v1924_v40 = vpop.f32.mrb[20].mxu0  ;;  %v1289_v42 = vadd.f32 %v1921_v20, %v1288_v36  ;;  %v2287_v44 = vpop.f32.mrb[20].mxu1 }
 0x11e   :  { %v581_v46 = vpop.f32.mrb[21].mxu0  ;;  %v2289_v47 = vpop.f32.mrb[21].mxu1  ;;  %v1363_v6 = vmul.f32 %v1924_v40, %v1924_v40 }
 0x11f   :  { %v1290_v48 = vadd.f32 %v1289_v42, %v581_v46  ;;  %v1361_v51 = vmul.f32 %v581_v46, %v581_v46  ;;  %v1423_v53 = vadd.f32 %v1422_v39, %v1360_v38  ;;  %v1925_v54 = vpop.f32.mrb[22].mxu0  ;;  %v2291_v55 = vpop.f32.mrb[22].mxu1 }
 0x120   :  { %v1713_v56 = vpack.c.bf16 %v1925_v54, %v1924_v40  ;;  %v584_v58 = vpop.f32.mrb[23].mxu0  ;;  %v1793_v59 = vpack.c.bf16 %v2291_v55, %v2287_v44  ;;  %v2295_v60 = vpop.f32.mrb[23].mxu1  ;;  %v1364_v10 = vmul.f32 %v1925_v54, %v1925_v54 }
 0x121   :  { %v1424_v63 = vadd.f32 %v1423_v53, %v1361_v51  ;;  %v1708_v1 = vpack.c.bf16 %v584_v58, %v581_v46  ;;  %v1291_v2 = vadd.f32 %v1290_v48, %v584_v58  ;;  %v1362_v3 = vmul.f32 %v584_v58, %v584_v58 }
 0x122   :  { %1825 = vst [vmem:[%s2463_s2 + $0x58] sm:$0xff] %v1713_v56   ;;  %1841 = vst [vmem:[%s2463_s2 + $0xd8] sm:$0xff] %v1793_v59   ;;  %v1788_v4 = vpack.c.bf16 %v2295_v60, %v2289_v47 }
 0x123   :  { %1824 = vst [vmem:[%s2463_s2 + $0x50] sm:$0xff] %v1708_v1   ;;  %v1292_v7 = vadd.f32 %v1924_v40, %v1291_v2  ;;  %v1425_v8 = vadd.f32 %v1424_v63, %v1362_v3 }
 0x124   :  { %1840 = vst [vmem:[%s2463_s2 + $0xd0] sm:$0xff] %v1788_v4  }
 0x125   :  { %v1426_v11 = vadd.f32 %v1425_v8, %v1363_v6  ;;  %v1928_v12 = vpop.f32.mrb[24].mxu0  ;;  %v1293_v13 = vadd.f32 %v1925_v54, %v1292_v7  ;;  %v2311_v15 = vpop.f32.mrb[24].mxu1 }
 0x126   :  { %v597_v17 = vpop.f32.mrb[25].mxu0  ;;  %v2313_v18 = vpop.f32.mrb[25].mxu1  ;;  %v1367_v39 = vmul.f32 %v1928_v12, %v1928_v12 }
 0x127   :  { %v1294_v19 = vadd.f32 %v1293_v13, %v597_v17  ;;  %v1365_v20 = vmul.f32 %v597_v17, %v597_v17  ;;  %v1427_v23 = vadd.f32 %v1426_v11, %v1364_v10  ;;  %v1929_v25 = vpop.f32.mrb[26].mxu0  ;;  %v2315_v26 = vpop.f32.mrb[26].mxu1 }
 0x128   :  { %v1723_v28 = vpack.c.bf16 %v1929_v25, %v1928_v12  ;;  %v600_v30 = vpop.f32.mrb[27].mxu0  ;;  %v1803_v31 = vpack.c.bf16 %v2315_v26, %v2311_v15  ;;  %v2319_v32 = vpop.f32.mrb[27].mxu1  ;;  %v1368_v46 = vmul.f32 %v1929_v25, %v1929_v25 }
 0x129   :  { %v1428_v34 = vadd.f32 %v1427_v23, %v1365_v20  ;;  %v1718_v35 = vpack.c.bf16 %v600_v30, %v597_v17  ;;  %v1295_v36 = vadd.f32 %v1294_v19, %v600_v30  ;;  %v1366_v37 = vmul.f32 %v600_v30, %v600_v30 }
 0x12a   :  { %1827 = vst [vmem:[%s2463_s2 + $0x68] sm:$0xff] %v1723_v28   ;;  %1843 = vst [vmem:[%s2463_s2 + $0xe8] sm:$0xff] %v1803_v31   ;;  %v1798_v38 = vpack.c.bf16 %v2319_v32, %v2313_v18  ;;  %v1373_v31 = vmul.f32 %v2169_v43, %v2169_v43 }
 0x12b   :  { %1826 = vst [vmem:[%s2463_s2 + $0x60] sm:$0xff] %v1718_v35   ;;  %v1296_v40 = vadd.f32 %v1928_v12, %v1295_v36  ;;  %v1429_v42 = vadd.f32 %v1428_v34, %v1366_v37 }
 0x12c   :  { %1842 = vst [vmem:[%s2463_s2 + $0xe0] sm:$0xff] %v1798_v38   ;;  %v1374_v38 = vmul.f32 %v2175_v50, %v2175_v50 }
 0x12d   :  { %v1430_v48 = vadd.f32 %v1429_v42, %v1367_v39  ;;  %v1932_v51 = vpop.f32.mrb[28].mxu0  ;;  %v1297_v53 = vadd.f32 %v1929_v25, %v1296_v40  ;;  %v2335_v54 = vpop.f32.mrb[28].mxu1  ;;  %v1375_v39 = vmul.f32 %v2167_v41, %v2167_v41 }
 0x12e   :  { %v613_v56 = vpop.f32.mrb[29].mxu0  ;;  %v2337_v58 = vpop.f32.mrb[29].mxu1  ;;  %v1371_v19 = vmul.f32 %v1932_v51, %v1932_v51 }
 0x12f   :  { %v1298_v59 = vadd.f32 %v1297_v53, %v613_v56  ;;  %v1369_v63 = vmul.f32 %v613_v56, %v613_v56  ;;  %v1431_v1 = vadd.f32 %v1430_v48, %v1368_v46  ;;  %v1933_v2 = vpop.f32.mrb[30].mxu0  ;;  %v2339_v3 = vpop.f32.mrb[30].mxu1  ;;  %v1376_v46 = vmul.f32 %v2171_v45, %v2171_v45 }
 0x130   :  { %v1733_v4 = vpack.c.bf16 %v1933_v2, %v1932_v51  ;;  %v616_v6 = vpop.f32.mrb[31].mxu0  ;;  %v1813_v7 = vpack.c.bf16 %v2339_v3, %v2335_v54  ;;  %v2343_v8 = vpop.f32.mrb[31].mxu1  ;;  %v1372_v25 = vmul.f32 %v1933_v2, %v1933_v2 }
 0x131   :  { %v1432_v10 = vadd.f32 %v1431_v1, %v1369_v63  ;;  %v1728_v11 = vpack.c.bf16 %v616_v6, %v613_v56  ;;  %v1299_v12 = vadd.f32 %v1298_v59, %v616_v6  ;;  %v1370_v13 = vmul.f32 %v616_v6, %v616_v6 }
 0x132   :  { %1829 = vst [vmem:[%s2463_s2 + $0x78] sm:$0xff] %v1733_v4   ;;  %1845 = vst [vmem:[%s2463_s2 + $0xf8] sm:$0xff] %v1813_v7   ;;  %v1808_v17 = vpack.c.bf16 %v2343_v8, %v2337_v58  ;;  %v1378_v63 = vmul.f32 %v2199_v9, %v2199_v9 }
 0x133   :  { %1828 = vst [vmem:[%s2463_s2 + $0x70] sm:$0xff] %v1728_v11   ;;  %v1300_v20 = vadd.f32 %v1932_v51, %v1299_v12  ;;  %v1433_v23 = vadd.f32 %v1432_v10, %v1370_v13  ;;  %v1382_v12 = vmul.f32 %v2223_v33, %v2223_v33 }
 0x134   :  { %1844 = vst [vmem:[%s2463_s2 + $0xf0] sm:$0xff] %v1808_v17  }
 0x135   :  { %v1434_v28 = vadd.f32 %v1433_v23, %v1371_v19  ;;  %v1301_v30 = vadd.f32 %v1933_v2, %v1300_v20 }
 0x137   :  { %v1302_v34 = vadd.f32 %v1301_v30, %v2169_v43  ;;  %v1435_v35 = vadd.f32 %v1434_v28, %v1372_v25  ;;  %v1377_v43 = vmul.f32 %v2193_v0, %v2193_v0  ;;  %v1386_v30 = vmul.f32 %v2247_v61, %v2247_v61 }
 0x139   :  { %v1436_v36 = vadd.f32 %v1435_v35, %v1373_v31  ;;  %v1303_v37 = vadd.f32 %v1302_v34, %v2175_v50 }
 0x13b   :  { %v1304_v40 = vadd.f32 %v2167_v41, %v1303_v37  ;;  %v1437_v42 = vadd.f32 %v1436_v36, %v1374_v38  ;;  %v1379_v41 = vmul.f32 %v2191_v62, %v2191_v62 }
 0x13d   :  { %v1438_v48 = vadd.f32 %v1437_v42, %v1375_v39  ;;  %v1305_v51 = vadd.f32 %v2171_v45, %v1304_v40  ;;  %v1380_v45 = vmul.f32 %v2195_v5, %v2195_v5  ;;  %v1390_v40 = vmul.f32 %v2271_v27, %v2271_v27 }
 0x13f   :  { %v1306_v53 = vadd.f32 %v1305_v51, %v2193_v0  ;;  %v1439_v56 = vadd.f32 %v1438_v48, %v1376_v46  ;;  %v1381_v0 = vmul.f32 %v2217_v24, %v2217_v24 }
 0x141   :  { %v1440_v59 = vadd.f32 %v1439_v56, %v1377_v43  ;;  %v1307_v50 = vadd.f32 %v1306_v53, %v2199_v9 }
 0x143   :  { %v1308_v1 = vadd.f32 %v2191_v62, %v1307_v50  ;;  %v1441_v2 = vadd.f32 %v1440_v59, %v1378_v63  ;;  %v1383_v62 = vmul.f32 %v2215_v22, %v2215_v22  ;;  %v1394_v59 = vmul.f32 %v2295_v60, %v2295_v60 }
 0x145   :  { %v1442_v4 = vadd.f32 %v1441_v2, %v1379_v41  ;;  %v1309_v6 = vadd.f32 %v2195_v5, %v1308_v1  ;;  %v1384_v5 = vmul.f32 %v2219_v29, %v2219_v29 }
 0x147   :  { %v1310_v7 = vadd.f32 %v1309_v6, %v2217_v24  ;;  %v1443_v10 = vadd.f32 %v1442_v4, %v1380_v45  ;;  %v1385_v24 = vmul.f32 %v2241_v52, %v2241_v52  ;;  %v1398_v6 = vmul.f32 %v2319_v32, %v2319_v32 }
 0x149   :  { %v1444_v11 = vadd.f32 %v1443_v10, %v1381_v0  ;;  %v1311_v9 = vadd.f32 %v1310_v7, %v2223_v33 }
 0x14b   :  { %v1312_v13 = vadd.f32 %v2215_v22, %v1311_v9  ;;  %v1445_v17 = vadd.f32 %v1444_v11, %v1382_v12  ;;  %v1387_v22 = vmul.f32 %v2239_v49, %v2239_v49 }
 0x14d   :  { %v1446_v19 = vadd.f32 %v1445_v17, %v1383_v62  ;;  %v1313_v20 = vadd.f32 %v2219_v29, %v1312_v13  ;;  %v1388_v29 = vmul.f32 %v2243_v57, %v2243_v57  ;;  %v1402_v13 = vmul.f32 %v2343_v8, %v2343_v8 }
 0x14f   :  { %v1314_v23 = vadd.f32 %v1313_v20, %v2241_v52  ;;  %v1447_v25 = vadd.f32 %v1446_v19, %v1384_v5  ;;  %v1389_v52 = vmul.f32 %v2265_v16, %v2265_v16 }
 0x151   :  { %v1448_v28 = vadd.f32 %v1447_v25, %v1385_v24  ;;  %v1315_v33 = vadd.f32 %v1314_v23, %v2247_v61 }
 0x153   :  { %v1316_v31 = vadd.f32 %v2239_v49, %v1315_v33  ;;  %v1449_v34 = vadd.f32 %v1448_v28, %v1386_v30  ;;  %v1391_v49 = vmul.f32 %v2263_v14, %v2263_v14 }
 0x155   :  { %v1450_v35 = vadd.f32 %v1449_v34, %v1387_v22  ;;  %v1317_v36 = vadd.f32 %v2243_v57, %v1316_v31  ;;  %v1392_v57 = vmul.f32 %v2267_v21, %v2267_v21 }
 0x157   :  { %v1318_v37 = vadd.f32 %v1317_v36, %v2265_v16  ;;  %v1451_v38 = vadd.f32 %v1450_v35, %v1388_v29  ;;  %v1393_v16 = vmul.f32 %v2289_v47, %v2289_v47 }
 0x159   :  { %v1452_v39 = vadd.f32 %v1451_v38, %v1389_v52  ;;  %v1319_v61 = vadd.f32 %v1318_v37, %v2271_v27 }
 0x15b   :  { %v1320_v42 = vadd.f32 %v2263_v14, %v1319_v61  ;;  %v1453_v46 = vadd.f32 %v1452_v39, %v1390_v40  ;;  %v1395_v14 = vmul.f32 %v2287_v44, %v2287_v44 }
 0x15d   :  { %v1454_v48 = vadd.f32 %v1453_v46, %v1391_v49  ;;  %v1321_v51 = vadd.f32 %v2267_v21, %v1320_v42  ;;  %v1396_v21 = vmul.f32 %v2291_v55, %v2291_v55 }
 0x15f   :  { %v1322_v43 = vadd.f32 %v1321_v51, %v2289_v47  ;;  %v1455_v53 = vadd.f32 %v1454_v48, %v1392_v57  ;;  %v1397_v47 = vmul.f32 %v2313_v18, %v2313_v18 }
 0x161   :  { %v1456_v56 = vadd.f32 %v1455_v53, %v1393_v16  ;;  %v1323_v27 = vadd.f32 %v1322_v43, %v2295_v60 }
 0x163   :  { %v1324_v50 = vadd.f32 %v2287_v44, %v1323_v27  ;;  %v1457_v63 = vadd.f32 %v1456_v56, %v1394_v59  ;;  %v1399_v44 = vmul.f32 %v2311_v15, %v2311_v15 }
 0x165   :  { %v1458_v41 = vadd.f32 %v1457_v63, %v1395_v14  ;;  %v1325_v1 = vadd.f32 %v2291_v55, %v1324_v50  ;;  %v1400_v55 = vmul.f32 %v2315_v26, %v2315_v26 }
 0x167   :  { %v1326_v2 = vadd.f32 %v1325_v1, %v2313_v18  ;;  %v1459_v45 = vadd.f32 %v1458_v41, %v1396_v21  ;;  %v1401_v18 = vmul.f32 %v2337_v58, %v2337_v58 }
 0x169   :  { %v1460_v4 = vadd.f32 %v1459_v45, %v1397_v47  ;;  %v1327_v60 = vadd.f32 %v1326_v2, %v2319_v32 }
 0x16b   :  { %v1328_v0 = vadd.f32 %v2311_v15, %v1327_v60  ;;  %v1461_v7 = vadd.f32 %v1460_v4, %v1398_v6  ;;  %v1403_v15 = vmul.f32 %v2335_v54, %v2335_v54 }
 0x16d   :  { %v1462_v10 = vadd.f32 %v1461_v7, %v1399_v44  ;;  %v1329_v11 = vadd.f32 %v2315_v26, %v1328_v0  ;;  %v1404_v26 = vmul.f32 %v2339_v3, %v2339_v3 }
 0x16f   :  { %v1330_v9 = vadd.f32 %v1329_v11, %v2337_v58  ;;  %v1463_v12 = vadd.f32 %v1462_v10, %v1400_v55 }
 0x171   :  { %v1464_v62 = vadd.f32 %v1463_v12, %v1401_v18  ;;  %v1331_v32 = vadd.f32 %v1330_v9, %v2343_v8 }
 0x173   :  { %v1332_v17 = vadd.f32 %v2335_v54, %v1331_v32  ;;  %v1465_v5 = vadd.f32 %v1464_v62, %v1402_v13 }
 0x175   :  { %v1333_v19 = vadd.f32 %v2339_v3, %v1332_v17  ;;  %v1466_v20 = vadd.f32 %v1465_v5, %v1403_v15 }
 0x177   :  { %v1334_v58 = vrot.slane %v1333_v19, 4  ;;  %v1467_v24 = vadd.f32 %v1466_v20, %v1404_v26 }
 0x179   :  { %v1335_v23 = vadd.f32 %v1334_v58, %v1333_v19  ;;  %v1468_v25 = vrot.slane %v1467_v24, 4 }
 0x17b   :  { %v1336_v28 = vrot.slane %v1335_v23, 2  ;;  %v1469_v33 = vadd.f32 %v1468_v25, %v1467_v24 }
 0x17d   :  { %v1337_v30 = vadd.f32 %v1336_v28, %v1335_v23  ;;  %v1470_v8 = vrot.slane %v1469_v33, 2 }
 0x17f   :  { %v1338_v22 = vrot.slane %v1337_v30, 1  ;;  %v1471_v31 = vadd.f32 %v1470_v8, %v1469_v33 }
 0x181   :  { %v1339_v34 = vadd.f32 %v1338_v22, %v1337_v30  ;;  %v1472_v29 = vrot.slane %v1471_v31, 1 }
 0x183   :  { %1340 = vst [vmem:[%s2464_s3] sm:$0x1] %v1339_v34  ;;  %v1473_v54 = vadd.f32 %v1472_v29, %v1471_v31 }
 0x185   :  { %1474 = vst [vmem:[%s2465_s4] sm:$0x1] %v1473_v54 }

</bundles_post_ra>
